<compile_context>
chip_gen: v7x
topology: tpu7x:2x2x1
jax: 0.10.0
libtpu: 0.0.40
codegen_flags: <defaults>
</compile_context>

<pallas_src>
import functools
import math

import jax
import jax.numpy as jnp
from jax import lax
from jax.experimental import pallas as pl
from jax.experimental.pallas import tpu as pltpu


# ----------------------------------------------------------------------------
# Activation parsing (mirrors MLP.get_activation_functions).
# ----------------------------------------------------------------------------
def _make_act(name):
    parts = name.split("_")
    kind = parts[0].lower()
    if kind == "none":
        return lambda x: x
    if kind == "relu":
        return lambda x: jnp.maximum(x, 0.0)
    if kind == "lrelu":  # torch.nn.LeakyReLU default negative_slope = 0.01
        return lambda x: jnp.where(x >= 0.0, x, 0.01 * x)
    if kind == "sigmoid":
        return jax.nn.sigmoid
    if kind == "xtanh":
        coef_x = 1.0 if len(parts) == 1 else float(parts[1])
        coef_tanh = 1.0 if len(parts) < 3 else float(parts[2])
        return lambda x: coef_tanh * jnp.tanh(x) + coef_x * x
    raise ValueError(f"unknown activation: {name}")


def _round_up(x, m):
    return ((x + m - 1) // m) * m


def _vmem_capacity_bytes():
    try:
        return int(pltpu.get_tpu_info().vmem_capacity_bytes)
    except Exception:
        return 64 << 20  # conservative: v7x per-TensorCore VMEM


# ----------------------------------------------------------------------------
# One fused kernel: applies a chain of (Linear + activation) layers with the
# weights resident in VMEM while streaming row tiles of the input.
# If `split = (n1, act1, act2)` is set, the LAST layer is the concatenated
# double head: act1 is applied to columns [0, n1) and act2 to the rest
# (zero-padded columns are sliced off by the wrapper).
# ----------------------------------------------------------------------------
def _fused_chain_kernel(*refs, acts, split, compute_dtype, precision):
    x_ref = refs[0]
    o_ref = refs[-1]
    wb = refs[1:-1]
    n_layers = len(acts)

    h = x_ref[...]
    for li in range(n_layers):
        w = wb[2 * li][...]
        b = wb[2 * li + 1][...].astype(jnp.float32)
        y = jnp.dot(
            h.astype(compute_dtype),
            w,
            preferred_element_type=jnp.float32,
            precision=precision,
        ) + b
        if li == n_layers - 1 and split is not None:
            n1, act_a, act_b = split
            col = lax.broadcasted_iota(jnp.int32, y.shape, dimension=1)
            h = jnp.where(col < n1, act_a(y), act_b(y))
        else:
            h = acts[li](y)
    o_ref[...] = h.astype(o_ref.dtype)


def _run_fused_group(x2d, layers, acts, split, *, out_dtype, compute_dtype,
                     tm_cap=256, precision=None):
    """Apply a chain of layers [(W, b), ...] fused in one pallas_call.

    Weights/biases are fully resident in VMEM (constant index_map); only the
    batch-row dimension is tiled.
    """
    M, K0 = x2d.shape
    n_out = layers[-1][0].shape[1]

    # Row tile: multiple of 8; aim for >= 2 parallel blocks (v7x has 2 TCs),
    # capped so the streamed tiles stay small next to the resident weights.
    if M <= 8:
        tm = 8
    else:
        tm = min(tm_cap, max(8, _round_up(pl.cdiv(M, 2), 8)))
    m_pad = _round_up(M, tm)
    if m_pad != M:
        x2d = jnp.pad(x2d, ((0, m_pad - M), (0, 0)))

    grid = (m_pad // tm,)

    in_specs = [pl.BlockSpec((tm, K0), lambda i: (i, 0))]
    args = [x2d.astype(compute_dtype)]
    itemsize = jnp.dtype(compute_dtype).itemsize
    resident_bytes = 0
    for (w, b) in layers:
        k, n = w.shape
        in_specs.append(pl.BlockSpec((k, n), lambda i: (0, 0)))
        in_specs.append(pl.BlockSpec((1, n), lambda i: (0, 0)))
        args.append(w.astype(compute_dtype))
        args.append(b.reshape(1, n).astype(jnp.float32))
        resident_bytes += w.size * itemsize + 4 * n

    out_specs = pl.BlockSpec((tm, n_out), lambda i: (i, 0))
    out_shape = jax.ShapeDtypeStruct((m_pad, n_out), out_dtype)

    # VMEM budget: double-buffered x/out tiles + (double-counted) resident
    # weights + headroom, capped at this generation's physical VMEM.
    tile_bytes = tm * K0 * itemsize + tm * n_out * jnp.dtype(out_dtype).itemsize
    cap = _vmem_capacity_bytes()
    vmem_limit = int(
        min(cap, max(32 << 20, 2 * resident_bytes + 2 * tile_bytes + (8 << 20)))
    )

    kernel = functools.partial(
        _fused_chain_kernel,
        acts=tuple(acts),
        split=split,
        compute_dtype=compute_dtype,
        precision=precision,  # pass lax.Precision.HIGHEST for bit-faithful f32 at large K
    )

    out = pl.pallas_call(
        kernel,
        out_shape=out_shape,
        grid=grid,
        in_specs=in_specs,
        out_specs=out_specs,
        compiler_params=pltpu.CompilerParams(
            dimension_semantics=("parallel",),
            vmem_limit_bytes=vmem_limit,
        ),
    )(*args)
    return out[:M]


# ----------------------------------------------------------------------------
# Full MLPDoubleHead forward.
# ----------------------------------------------------------------------------
def mlp_double_head_forward(x, params, *, compute_dtype=jnp.float32, tm_cap=256):
    lead = x.shape[:-1]
    rep = x.reshape(-1, x.shape[-1])
    out_dtype = x.dtype

    # Concatenate the two heads along N and zero-pad to a lane-dense slab.
    w1, b1 = params["head1"]
    w2, b2 = params["head2"]
    n1, n2 = w1.shape[1], w2.shape[1]
    n_head = n1 + n2
    n_head_pad = _round_up(n_head, 128)
    kh = w1.shape[0]
    wh = jnp.zeros((kh, n_head_pad), w1.dtype)
    wh = wh.at[:, :n1].set(w1).at[:, n1:n_head].set(w2)
    bh = jnp.zeros((n_head_pad,), b1.dtype)
    bh = bh.at[:n1].set(b1).at[n1:n_head].set(b2)

    act1 = _make_act(params["head1_act"])
    act2 = _make_act(params["head2_act"])

    # Full layer list: trunk layers then the fused double head.
    layers = [(w, b) for (w, b, _) in params["trunk"]] + [(wh, bh)]
    acts = [_make_act(a) for (_, _, a) in params["trunk"]] + [lambda y: y]

    # Group layers so that resident weights stay under a per-generation VMEM
    # budget.  For MLP-sized nets this is a SINGLE fully fused pallas_call.
    itemsize = jnp.dtype(compute_dtype).itemsize
    budget = int(0.4 * _vmem_capacity_bytes())
    groups, cur, cur_bytes = [], [], 0
    for idx, (w, _) in enumerate(layers):
        wbytes = 2 * w.size * itemsize  # double-buffer accounting
        if cur and cur_bytes + wbytes > budget:
            groups.append(cur)
            cur, cur_bytes = [], 0
        cur.append(idx)
        cur_bytes += wbytes
    groups.append(cur)
    # TODO(synk): K/N-tiled fallback for a single layer whose weights alone
    # exceed the VMEM budget (not needed for MLP-sized layers).

    for gi, grp in enumerate(groups):
        is_last = gi == len(groups) - 1
        rep = _run_fused_group(
            rep,
            [layers[i] for i in grp],
            [acts[i] for i in grp],
            (n1, act1, act2) if is_last else None,
            out_dtype=out_dtype if is_last else compute_dtype,
            compute_dtype=compute_dtype,
            tm_cap=tm_cap,
        )

    o1 = rep[:, :n1].reshape(*lead, n1)
    o2 = rep[:, n1:n_head].reshape(*lead, n2)
    return o1, o2


# ----------------------------------------------------------------------------
# Pure-JAX reference and parameter init (PyTorch nn.Linear-style).
# ----------------------------------------------------------------------------
def reference_forward(x, params):
    rep = x
    for w, b, act_name in params["trunk"]:
        rep = _make_act(act_name)(rep @ w + b)
    w1, b1 = params["head1"]
    w2, b2 = params["head2"]
    o1 = _make_act(params["head1_act"])(rep @ w1 + b1)
    o2 = _make_act(params["head2_act"])(rep @ w2 + b2)
    return o1, o2


def _init_linear(key, fan_in, fan_out):
    kw, kb = jax.random.split(key)
    bound = 1.0 / math.sqrt(fan_in)
    w = jax.random.uniform(kw, (fan_in, fan_out), jnp.float32, -bound, bound)
    b = jax.random.uniform(kb, (fan_out,), jnp.float32, -bound, bound)
    return w, b


if __name__ == "__main__":
    key = jax.random.PRNGKey(0)

    # Small shapes consistent with MLPDoubleHead(input_dim=32, hidden_dims=[64,32],
    # head1_dim=16, head2_dim=8, hidden_activations=["relu","xtanh_1.0_0.5"],
    # head1_activation="none", head2_activation="sigmoid").
    batch, input_dim = 16, 32
    hidden_dims = [64, 32]
    head1_dim, head2_dim = 16, 8
    hidden_activations = ["relu", "xtanh_1.0_0.5"]
    head1_activation = "none"
    head2_activation = "sigmoid"

    n_keys = 1 + len(hidden_dims) + 2
    keys = jax.random.split(key, n_keys)
    x = jax.random.normal(keys[0], (batch, input_dim), jnp.float32)

    dims = [input_dim] + hidden_dims
    trunk = []
    for li in range(len(hidden_dims)):
        w, b = _init_linear(keys[1 + li], dims[li], dims[li + 1])
        trunk.append((w, b, hidden_activations[li]))

    heads_in = hidden_dims[-1] if hidden_dims else input_dim
    w1, b1 = _init_linear(keys[1 + len(hidden_dims)], heads_in, head1_dim)
    w2, b2 = _init_linear(keys[2 + len(hidden_dims)], heads_in, head2_dim)

    params = {
        "trunk": trunk,
        "head1": (w1, b1),
        "head2": (w2, b2),
        "head1_act": head1_activation,
        "head2_act": head2_activation,
    }

    out1, out2 = mlp_double_head_forward(x, params)
    jax.block_until_ready((out1, out2))

    ref1, ref2 = reference_forward(x, params)
    assert out1.shape == (batch, head1_dim) and out2.shape == (batch, head2_dim)
    assert jnp.allclose(out1, ref1, atol=1e-5, rtol=1e-5)
    assert jnp.allclose(out2, ref2, atol=1e-5, rtol=1e-5)
    print("KERNEL_OK")
</pallas_src>

<mosaic_0001>
module attributes {stable_mosaic.version = 11 : i64} {
  func.func @_fused_chain_kernel(%arg0: i32, %arg1: memref<8x32xf32, #tpu.memory_space<vmem>>, %arg2: memref<32x64xf32, #tpu.memory_space<vmem>>, %arg3: memref<1x64xf32, #tpu.memory_space<vmem>>, %arg4: memref<64x32xf32, #tpu.memory_space<vmem>>, %arg5: memref<1x32xf32, #tpu.memory_space<vmem>>, %arg6: memref<32x128xf32, #tpu.memory_space<vmem>>, %arg7: memref<1x128xf32, #tpu.memory_space<vmem>>, %arg8: memref<8x128xf32, #tpu.memory_space<vmem>>) attributes {dimension_semantics = [#tpu.dimension_semantics<parallel>], iteration_bounds = array<i64: 2>, scalar_prefetch = 0 : i64, scratch_operands = 0 : i64, tpu.core_type = #tpu.core_type<tc>, window_params = [{transform_indices = @transform_0, window_bounds = array<i64: 8, 32>}, {pipeline_mode = #tpu.pipeline_mode<synchronous>, transform_indices = @transform_1, window_bounds = array<i64: 32, 64>}, {pipeline_mode = #tpu.pipeline_mode<synchronous>, transform_indices = @transform_2, window_bounds = array<i64: 1, 64>}, {pipeline_mode = #tpu.pipeline_mode<synchronous>, transform_indices = @transform_3, window_bounds = array<i64: 64, 32>}, {pipeline_mode = #tpu.pipeline_mode<synchronous>, transform_indices = @transform_4, window_bounds = array<i64: 1, 32>}, {pipeline_mode = #tpu.pipeline_mode<synchronous>, transform_indices = @transform_5, window_bounds = array<i64: 32, 128>}, {pipeline_mode = #tpu.pipeline_mode<synchronous>, transform_indices = @transform_6, window_bounds = array<i64: 1, 128>}, {transform_indices = @transform_7, window_bounds = array<i64: 8, 128>}]} {
    %c0 = arith.constant 0 : index
    %c0_0 = arith.constant 0 : index
    %0 = vector.load %arg1[%c0, %c0_0] : memref<8x32xf32, #tpu.memory_space<vmem>>, vector<8x32xf32>
    %c0_1 = arith.constant 0 : index
    %c0_2 = arith.constant 0 : index
    %1 = vector.load %arg2[%c0_1, %c0_2] : memref<32x64xf32, #tpu.memory_space<vmem>>, vector<32x64xf32>
    %c0_3 = arith.constant 0 : index
    %c0_4 = arith.constant 0 : index
    %2 = vector.load %arg3[%c0_3, %c0_4] : memref<1x64xf32, #tpu.memory_space<vmem>>, vector<1x64xf32>
    %cst = arith.constant dense<0.000000e+00> : vector<8x64xf32>
    %3 = tpu.matmul %0, %1, %cst {dimension_numbers = #tpu.dot_dimension_numbers<[1], [0], [0], [1], [0, 0, 1, 1], [], []>} : vector<8x32xf32>, vector<32x64xf32>, vector<8x64xf32> -> vector<8x64xf32>
    %4 = vector.broadcast %2 : vector<1x64xf32> to vector<8x64xf32>
    %5 = arith.addf %3, %4 : vector<8x64xf32>
    %cst_5 = arith.constant 0.000000e+00 : f32
    %6 = vector.broadcast %cst_5 : f32 to vector<8x64xf32>
    %7 = arith.maximumf %5, %6 : vector<8x64xf32>
    %c0_6 = arith.constant 0 : index
    %c0_7 = arith.constant 0 : index
    %8 = vector.load %arg4[%c0_6, %c0_7] : memref<64x32xf32, #tpu.memory_space<vmem>>, vector<64x32xf32>
    %c0_8 = arith.constant 0 : index
    %c0_9 = arith.constant 0 : index
    %9 = vector.load %arg5[%c0_8, %c0_9] : memref<1x32xf32, #tpu.memory_space<vmem>>, vector<1x32xf32>
    %cst_10 = arith.constant dense<0.000000e+00> : vector<8x32xf32>
    %10 = tpu.matmul %7, %8, %cst_10 {dimension_numbers = #tpu.dot_dimension_numbers<[1], [0], [0], [1], [0, 0, 1, 1], [], []>} : vector<8x64xf32>, vector<64x32xf32>, vector<8x32xf32> -> vector<8x32xf32>
    %11 = vector.broadcast %9 : vector<1x32xf32> to vector<8x32xf32>
    %12 = arith.addf %10, %11 : vector<8x32xf32>
    %13 = math.tanh %12 : vector<8x32xf32>
    %cst_11 = arith.constant 5.000000e-01 : f32
    %14 = vector.broadcast %cst_11 : f32 to vector<8x32xf32>
    %15 = arith.mulf %14, %13 : vector<8x32xf32>
    %cst_12 = arith.constant 1.000000e+00 : f32
    %16 = vector.broadcast %cst_12 : f32 to vector<8x32xf32>
    %17 = arith.mulf %16, %12 : vector<8x32xf32>
    %18 = arith.addf %15, %17 : vector<8x32xf32>
    %c0_13 = arith.constant 0 : index
    %c0_14 = arith.constant 0 : index
    %19 = vector.load %arg6[%c0_13, %c0_14] : memref<32x128xf32, #tpu.memory_space<vmem>>, vector<32x128xf32>
    %c0_15 = arith.constant 0 : index
    %c0_16 = arith.constant 0 : index
    %20 = vector.load %arg7[%c0_15, %c0_16] : memref<1x128xf32, #tpu.memory_space<vmem>>, vector<1x128xf32>
    %cst_17 = arith.constant dense<0.000000e+00> : vector<8x128xf32>
    %21 = tpu.matmul %18, %19, %cst_17 {dimension_numbers = #tpu.dot_dimension_numbers<[1], [0], [0], [1], [0, 0, 1, 1], [], []>} : vector<8x32xf32>, vector<32x128xf32>, vector<8x128xf32> -> vector<8x128xf32>
    %22 = vector.broadcast %20 : vector<1x128xf32> to vector<8x128xf32>
    %23 = arith.addf %21, %22 : vector<8x128xf32>
    %24 = tpu.iota {dimensions = array<i32: 1>} : vector<8x128xi32>
    %c16_i32 = arith.constant 16 : i32
    %25 = vector.broadcast %c16_i32 : i32 to vector<8x128xi32>
    %26 = arith.cmpi slt, %24, %25 : vector<8x128xi32>
    %27 = arith.negf %23 : vector<8x128xf32>
    %28 = math.exp %27 : vector<8x128xf32>
    %cst_18 = arith.constant 1.000000e+00 : f32
    %29 = vector.broadcast %cst_18 : f32 to vector<8x128xf32>
    %30 = arith.addf %29, %28 : vector<8x128xf32>
    %31 = arith.divf %29, %30 : vector<8x128xf32>
    %32 = arith.select %26, %23, %31 : vector<8x128xi1>, vector<8x128xf32>
    %c0_19 = arith.constant 0 : index
    %c0_20 = arith.constant 0 : index
    %33 = vector.load %arg8[%c0_19, %c0_20] : memref<8x128xf32, #tpu.memory_space<vmem>>, vector<8x128xf32>
    tpu.vector_store %arg8[%c0_19, %c0_20], %32 {strides = array<i32>} : memref<8x128xf32, #tpu.memory_space<vmem>>, vector<8x128xf32>,
    return
  }
  func.func @transform_0(%arg0: i32) -> (i32, i32) {
    %c0_i32 = arith.constant 0 : i32
    %c0_i32_0 = arith.constant 0 : i32
    return %arg0, %c0_i32 : i32, i32
  }
  func.func @transform_1(%arg0: i32) -> (i32, i32) {
    %c0_i32 = arith.constant 0 : i32
    %c0_i32_0 = arith.constant 0 : i32
    %c0_i32_1 = arith.constant 0 : i32
    return %c0_i32, %c0_i32_0 : i32, i32
  }
  func.func @transform_2(%arg0: i32) -> (i32, i32) {
    %c0_i32 = arith.constant 0 : i32
    %c0_i32_0 = arith.constant 0 : i32
    %c0_i32_1 = arith.constant 0 : i32
    return %c0_i32, %c0_i32_0 : i32, i32
  }
  func.func @transform_3(%arg0: i32) -> (i32, i32) {
    %c0_i32 = arith.constant 0 : i32
    %c0_i32_0 = arith.constant 0 : i32
    %c0_i32_1 = arith.constant 0 : i32
    return %c0_i32, %c0_i32_0 : i32, i32
  }
  func.func @transform_4(%arg0: i32) -> (i32, i32) {
    %c0_i32 = arith.constant 0 : i32
    %c0_i32_0 = arith.constant 0 : i32
    %c0_i32_1 = arith.constant 0 : i32
    return %c0_i32, %c0_i32_0 : i32, i32
  }
  func.func @transform_5(%arg0: i32) -> (i32, i32) {
    %c0_i32 = arith.constant 0 : i32
    %c0_i32_0 = arith.constant 0 : i32
    %c0_i32_1 = arith.constant 0 : i32
    return %c0_i32, %c0_i32_0 : i32, i32
  }
  func.func @transform_6(%arg0: i32) -> (i32, i32) {
    %c0_i32 = arith.constant 0 : i32
    %c0_i32_0 = arith.constant 0 : i32
    %c0_i32_1 = arith.constant 0 : i32
    return %c0_i32, %c0_i32_0 : i32, i32
  }
  func.func @transform_7(%arg0: i32) -> (i32, i32) {
    %c0_i32 = arith.constant 0 : i32
    %c0_i32_0 = arith.constant 0 : i32
    return %arg0, %c0_i32 : i32, i32
  }
}

</mosaic_0001>

<bundles_post_ra>
// kernel: tpu_custom_call.1
= control target key start
LH: loop header
LB: loop body
LE: loop exit
PB: predicated region body
PF: predicated region fallthrough
CT: control target
= control target key end

     0   :  { %12 = vsyncpa [#allocation3], 0  ;;  %s1040_s0 = inlined_call_operand.vmem [shape: f32[16,32], index: 0, kind: input, shape index: {}]   ;;  %s1041_s1 = inlined_call_operand.vmem [shape: f32[32,64], index: 1, kind: input, shape index: {}]   ;;  %s1042_s2 = inlined_call_operand.vmem [shape: f32[1,64], index: 2, kind: input, shape index: {}]   ;;  %s1043_s3 = inlined_call_operand.vmem [shape: f32[64,32], index: 3, kind: input, shape index: {}]   ;;  %s1044_s4 = inlined_call_operand.vmem [shape: f32[1,32], index: 4, kind: input, shape index: {}]   ;;  %s1045_s5 = inlined_call_operand.vmem [shape: f32[32,128], index: 5, kind: input, shape index: {}]   ;;  %s1046_s6 = inlined_call_operand.vmem [shape: f32[1,128], index: 6, kind: input, shape index: {}]   ;;  %s1047_s7 = inlined_call_operand.hbm [shape: f32[16,128], index: 7, kind: output, shape index: {}]  }
   0x1   :  { %14 = vsyncpa [#allocation3 + $0x1], 0  ;;  %s878_s24 = smov 0   ;;  %s880_s25 = smov 0  }
   0x2   :  { %s882_s26 = smov 0   ;;  %s884_s27 = smov 0  }
   0x3 LB: > { %s899_s28 = sadd.s32 4294967295, %s832_s27   ;;  %s621_s29 = sadd.s32 4294967294, %s832_s27   ;;  %s832_s27 = sphi %s884_s27, %s1053_s27   ;;  %s828_s26 = sphi %s882_s26, %s1052_s26   ;;  %s824_s25 = sphi %s880_s25, %s1051_s25   ;;  %s820_s24 = sphi %s878_s24, %s1050_s24  }
   0x4   : > { %s903_s30 = sadd.s32 1, %s832_s27   ;;  %s179_s8 = sadd.s32 1, %s828_s26 }
   0x5   : > { %s176_s9 = ssub.s32 %s832_s27, %s903_s30  ;;  %p189_p0 = scmp.ne.s32.totalorder %s828_s26, %s824_s25 }
   0x6   : > { %p177_p1 = scmp.eq.s32.totalorder %s176_s9, 0  ;;  %p190_p2 = scmp.eq.s32.totalorder %s899_s28, 1 }
   0x7   : > { %p195_p3 = scmp.ne.s32.totalorder %s824_s25, %s820_s24  ;;  %p196_p4 = scmp.eq.s32.totalorder %s621_s29, 1 }
   0x8   : > { %s914_s10 = scalar_select %p177_p1, %s828_s26, %s179_s8  }
   0x9   : > { %p916_p5 = por %p190_p2, %p189_p0  ;;  %p920_p6 = por %p196_p4, %p195_p3 }
   0xa   : > { %p624_p7 = scmp.ge.s32.totalorder %s832_s27, 1  ;;  %p239_p8 = scmp.lt.s32.totalorder %s832_s27, 3 }
   0xc   : > { %p240_p9 = pnand %p624_p7, %p239_p8 }
   0xd   : > { %v275_v0 = vld [vmem:[%s1041_s1] sm:$0xff] (!%p240_p9)  ;;  %v276_v1 = vld [vmem:[%s1041_s1 + $0x8] sm:$0xff] (!%p240_p9)  ;;  %v277_v2 = vld [vmem:[%s1041_s1 + $0x10] sm:$0xff] (!%p240_p9)  ;;  %v834_v3 = vmov (!%p240_p9), 0.0|0.0   ;;  %vm835_vm0 = vmmov (!%p240_p9), 0   ;;  %v836_v6 = vmov (!%p240_p9), 0.0   ;;  %v537_v46 = vlaneseq (!%p240_p9) }
   0xe   : > { %243 = sbr.rel (%p240_p9) target bundleno = 726 (0x2d6), region = 48  ;;  %698 = vmatprep.subr.bf16.mxu0 (!%p240_p9), %v834_v3  ;;  %v699_v4 = vpack.c.bf16 (!%p240_p9), %v276_v1, %v275_v0  ;;  %v278_v5 = vld [vmem:[%s1041_s1 + $0x18] sm:$0xff] (!%p240_p9)  ;;  %665 = vmatprep.mubr.msk.f32.mxu0 (!%p240_p9), %vm835_vm0, %v836_v6  ;;  %p270_p10 = scmp.lt.s32.totalorder (!%p240_p9), %s899_s28, 1  ;;  %v361_v7 = vld [vmem:[%s1043_s3] sm:$0xff] (!%p240_p9)  ;;  %v362_v8 = vld [vmem:[%s1043_s3 + $0x8] sm:$0xff] (!%p240_p9)  ;;  %vm286_vm1 = vcmask (!%p240_p9), 261120  }
   0xf   : > { %704 = vmatprep.subr.bf16.mxu1 (!%p240_p9), %v834_v3  ;;  %v705_v9 = vpack.c.bf16 (!%p240_p9), %v362_v8, %v361_v7  ;;  %v363_v10 = vld [vmem:[%s1043_s3 + $0x10] sm:$0xff] (!%p240_p9)  ;;  %v364_v11 = vld [vmem:[%s1043_s3 + $0x18] sm:$0xff] (!%p240_p9)  ;;  %684 = vmatprep.mubr.msk.f32.mxu1 (!%p240_p9), %vm835_vm0, %v836_v6  ;;  %v702_v12 = vpack.c.bf16 (!%p240_p9), %v278_v5, %v277_v2  ;;  %v365_v14 = vld [vmem:[%s1043_s3 + $0x20] sm:$0xff] (!%p240_p9)  ;;  %vm376_vm2 = vcmask (!%p240_p9), 523264   ;;  %s267_s14 = sand.u32 (!%p240_p9), 1, %s824_s25   ;;  %v538_v47 = vand.u32 (!%p240_p9), 127, %v537_v46 }
  0x10   : > { %700 = vmatpush3.bf16.msra.mxu0 (!%p240_p9), %v699_v4  ;;  %v708_v13 = vpack.c.bf16 (!%p240_p9), %v364_v11, %v363_v10  ;;  %v366_v15 = vld [vmem:[%s1043_s3 + $0x28] sm:$0xff] (!%p240_p9)  ;;  %v367_v18 = vld [vmem:[%s1043_s3 + $0x30] sm:$0xff] (!%p240_p9)  ;;  %v368_v19 = vld [vmem:[%s1043_s3 + $0x38] sm:$0xff] (!%p240_p9)  ;;  %s549_s22 = scalar_lea.sflag (!%p240_p9), [#allocation3], %s267_s14 }
  0x11   : > { %701 = vmatprep.subr.bf16.mxu0 (!%p240_p9), %v834_v3  ;;  %706 = vmatpush3.bf16.msra.mxu1 (!%p240_p9), %v705_v9  ;;  %v711_v17 = vpack.c.bf16 (!%p240_p9), %v366_v15, %v365_v14  ;;  %v714_v20 = vpack.c.bf16 (!%p240_p9), %v368_v19, %v367_v18  ;;  %v627_v21 = vld [vmem:[%s1042_s2] ss:$0 sm:$0xff] (!%p240_p9)  ;;  %v454_v27 = vld [vmem:[%s1045_s5 + $0x8] sm:$0xff] (!%p240_p9)  ;;  %v455_v29 = vld [vmem:[%s1045_s5 + $0x10] sm:$0xff] (!%p240_p9)  ;;  %vm539_vm3 = vcmp.lt.s32.totalorder (!%p240_p9), %v538_v47, 16 }
  0x12   : > { %707 = vmatprep.subr.bf16.mxu1 (!%p240_p9), %v834_v3  ;;  %v453_v26 = vld [vmem:[%s1045_s5] sm:$0xff] (!%p240_p9)  ;;  %v456_v30 = vld [vmem:[%s1045_s5 + $0x18] sm:$0xff] (!%p240_p9) }
  0x13   : > { %v717_v28 = vpack.c.bf16 (!%p240_p9), %v454_v27, %v453_v26  ;;  %v720_v31 = vpack.c.bf16 (!%p240_p9), %v456_v30, %v455_v29  ;;  %v629_v32 = vld [vmem:[%s1044_s4] ss:$0 sm:$0xff] (!%p240_p9) }
  0x14   : > { %703 = vmatpush3.bf16.msra.mxu0 (!%p240_p9), %v702_v12  ;;  %v631_v39 = vld [vmem:[%s1046_s6] ss:$0 sm:$0xff] (!%p240_p9) }
  0x15   : > { %s271_s15 = scalar_select %p270_p10, %s899_s28, 1  ;;  %709 = vmatpush3.bf16.msra.mxu1 %v708_v13  ;;  %716 = vmatprep.subr.bf16.mxu0 %v834_v3 }
  0x16   : > { %710 = vmatprep.subr.bf16.mxu1 %v834_v3 }
  0x17   : > { %s626_s16 = sshll.u32 %s271_s15, 3  ;;  %s625_s15 = sshll.u32 %s267_s14, 3 }
  0x18   : > { %s273_s23 = scalar_lea.vmem %s1040_s0, %s626_s16  ;;  %s635_s16 = sshll.u32 %s899_s28, 7 }
  0x19   : > { %v274_v16 = vld [vmem:[%s273_s23] sm:$0xff]  ;;  %712 = vmatpush3.bf16.msra.mxu1 %v711_v17  ;;  %s269_s17 = scalar_lea.vmem [#allocation2], %s625_s15  ;;  %s998_s21 = scalar_lea.hbm %s1047_s7, %s635_s16 }
  0x1a   : > { %666 = vmatmul.mubr.msk.f32.vlgmr.msra.gmra.mrb[0].mxu0 %vm286_vm1, %v274_v16  ;;  %713 = vmatprep.subr.bf16.mxu1 %v834_v3  ;;  %s562_s18 = sshll.u32 %s269_s17, 4  ;;  %s837_s28 = smov [#allocation2]   ;;  %s1000_s18 = int_to_ptr.vmem [resolvable:$true] %s562_s18 }
  0x1b   : > { %695 = vmatprep.mubr.msk.f32.mxu0 %vm835_vm0, %v836_v6  ;;  %718 = vmatpush3.bf16.msra.mxu0 %v717_v28  ;;  %s770_s23 = scalar_lea.vmem %s1000_s18, 128  ;;  %s774_s29 = sshll.u32 %s837_s28, 4  ;;  %s775_s29 = int_to_ptr.vmem [resolvable:$false] %s774_s29 }
  0x1c   : > { %719 = vmatprep.subr.bf16.mxu0 %v834_v3  ;;  %p771_p11 = scmp.ne.s32.totalorder %s1000_s18, %s770_s23  ;;  %s776_s8 = scalar_lea.vmem %s775_s29, 256 }
  0x1d   : > { %715 = vmatpush3.bf16.msra.mxu1 %v714_v20  ;;  %p777_p0 = scmp.lt.s32.totalorder %s1000_s18, %s775_s29  ;;  %p778_p1 = scmp.lt.s32.totalorder %s776_s8, %s770_s23 }
  0x1e   : > { %p772_p12 = pnand %p771_p11, %p916_p5 }
  0x1f   : > { %721 = vmatpush3.bf16.msra.mxu0 %v720_v31  ;;  %p779_p2 = por %p778_p1, %p777_p0 }
  0x20   : > { %p773_p13 = pneg %p772_p12 }
  0x22   : > { %p780_p3 = pnand %p779_p2, %p773_p13 }
  0xed   : > { %v356_v22 = vpop.f32.mrb[0].mxu0 }
  0xee   : > { %v357_v23 = vadd.f32 %v627_v21, %v356_v22  ;;  %v667_v24 = vpop.f32.mrb[1].mxu0 }
  0xf0   : > { %v360_v25 = vmax.f32 %v357_v23, 0.0 }
  0xf2   : > { %685 = vmatmul.mubr.msk.f32.vlgmr.msra.gmra.mrb[0].mxu1 %vm376_vm2, %v360_v25 }
 0x1c5   : > { %v446_v33 = vpop.f32.mrb[0].mxu1 }
 0x1c6   : > { %v447_v34 = vadd.f32 %v629_v32, %v446_v33  ;;  %v686_v35 = vpop.f32.mrb[1].mxu1 }
 0x1c8   : > { %764 = vtanh.f32 %v447_v34 }
 0x1d2   : > { %v765_v36 = vpop.eup %764 }
 0x1d3   : > { %v451_v37 = vmul.f32 0.5, %v765_v36 }
 0x1d5   : > { %v452_v38 = vadd.f32 %v451_v37, %v447_v34 }
 0x1d7   : > { %696 = vmatmul.mubr.msk.f32.vlgmr.msra.gmra.mrb[2].mxu0 %vm286_vm1, %v452_v38 }
 0x2aa   : > { %v533_v40 = vpop.f32.mrb[2].mxu0 }
 0x2ab   : > { %v534_v41 = vadd.f32 %v631_v39, %v533_v40  ;;  %v697_v42 = vpop.f32.mrb[3].mxu0 }
 0x2ad   : > { %v633_v43 = vmul.f32 -1.442695, %v534_v41 }
 0x2af   : > { %766 = vpow2.f32 %v633_v43 }
 0x2b9   : > { %v767_v44 = vpop.eup %766 }
 0x2ba   : > { %v543_v45 = vadd.f32 1.0, %v767_v44 }
 0x2bc   : > { %768 = vrcp.f32 %v543_v45 }
 0x2c6   : > { %v769_v48 = vpop.eup %768 }
 0x2c7   : > { %v546_v49 = vsel %vm539_vm3, %v534_v41, %v769_v48 }
 0x2c8   : > { %547 = vst [vmem:[%s269_s17] sm:$0xff] %v546_v49 }
 0x2c9   : > { %783 = shalt.err (!%p780_p3)
}
 0x2ca   : > { %s784_s9 = scalar_lea.hbm %s998_s21, 128  ;;  %s788_s15 = scalar_lea.hbm %s1047_s7, 256 }
 0x2cb   : > { %p785_p4 = scmp.ne.s32.totalorder %s998_s21, %s784_s9  ;;  %p789_p9 = scmp.lt.u32.totalorder %s998_s21, %s1047_s7 }
 0x2cc   : > { %p790_p10 = scmp.lt.u32.totalorder %s788_s15, %s784_s9  ;;  %p792_p12 = scmp.lt.u32.totalorder %s784_s9, %s998_s21 }
 0x2cd   : > { %p786_p7 = pnand %p785_p4, %p916_p5 }
 0x2ce   : > { %p791_p11 = por %p790_p10, %p789_p9 }
 0x2cf   : > { %p787_p8 = pneg %p786_p7 }
 0x2d0   : > { %p793_p13 = por %p792_p12, %p791_p11 }
 0x2d2   : > { %p794_p0 = pnand %p793_p13, %p787_p8 }
 0x2d4   : > { %797 = shalt.err (!%p794_p0)
}
 0x2d5   : > { %722 = dma.vmem_to_hbm [thread:$0]  (%p916_p5), %s1000_s18, 128, %s998_s21, %s549_s22  }
 0x2d6 PF: > { %p728_p1 = scmp.ge.s32.totalorder %s832_s27, 2  ;;  %s574_s19 = sand.u32 1, %s820_s24  }
 0x2d7   : > { %s575_s20 = scalar_lea.sflag [#allocation3], %s574_s19 }
 0x2d8   : > { %p725_p2 = pnand %p728_p1, %p920_p6 }
 0x2da   : > { %815 = dma.done.wait (!%p725_p2), %s575_s20, 128  }
 0x2db   : > { %817 = vsyncadd (!%p725_p2), %s575_s20, 4294967168  ;;  %p17_p3 = scmp.ge.s32.totalorder %s903_s30, 4   ;;  %s1050_s24 = smov %s824_s25 }
 0x2dc   : > { %s1051_s25 = smov %s828_s26  ;;  %s1052_s26 = smov %s914_s10 }
 0x2dd   : > { %s1053_s27 = smov %s903_s30  ;;  %19 = sbr.rel (!%p17_p3) target bundleno = 3 (0x3), region = 83 }
 0x2e4   :  { %580 = vsyncpa [#allocation3], 1 }
 0x2e5   :  { %582 = vsyncpa [#allocation3 + $0x1], 1 }

</bundles_post_ra>
